<compile_context>
chip_gen: v7x
topology: tpu7x:2x2x1
jax: 0.10.0
libtpu: 0.0.40
codegen_flags: <defaults>
</compile_context>

<pallas_src>
import jax
import jax.numpy as jnp
from jax.experimental import pallas as pl
from jax.experimental.pallas import tpu as pltpu


def _round_up(x, m):
    return ((x + m - 1) // m) * m


def _cdiv(a, b):
    return (a + b - 1) // b


_TM_MAX = 256  # max MXU rows per tile


def _vmem_budgets():
    """(per-step tile budget, scoped vmem limit) derived from the chip."""
    try:
        cap = pltpu.get_tpu_info().vmem_capacity_bytes
    except Exception:
        cap = 64 * 1024 * 1024  # be conservative (v7x-sized VMEM)
    if cap >= 128 * 1024 * 1024:               # v5e / v6e: 128 MiB physical
        return 40 * 1024 * 1024, 96 * 1024 * 1024
    return 12 * 1024 * 1024, 32 * 1024 * 1024  # v7x: 64 MiB physical


# ----------------------------- kernels --------------------------------------


def _encoder_kernel_fused(x_ref, w_ref, b_ref, o_ref):
    """Single K step per output tile: matmul + bias + ReLU, no scratch."""
    acc = jnp.dot(x_ref[...], w_ref[...], preferred_element_type=jnp.float32)
    o_ref[...] = jnp.maximum(acc + b_ref[...], 0.0).astype(o_ref.dtype)


def _encoder_kernel_ksplit(x_ref, w_ref, b_ref, o_ref, acc_ref):
    """K-tiled variant with an f32 VMEM accumulator (only for very large K)."""
    k = pl.program_id(2)

    @pl.when(k == 0)
    def _():
        acc_ref[...] = jnp.zeros_like(acc_ref)

    acc_ref[...] += jnp.dot(
        x_ref[...], w_ref[...], preferred_element_type=jnp.float32
    )

    @pl.when(k == pl.num_programs(2) - 1)
    def _():
        o_ref[...] = jnp.maximum(acc_ref[...] + b_ref[...], 0.0).astype(o_ref.dtype)


# ----------------------------- setup-time packing ----------------------------


def prepare_encoder_params(w_t, b, *, weight_dtype=jnp.bfloat16):
    """Cast + pad the (K, N) weight and (N,) bias ONCE at model setup.

    w_t is the transpose of the PyTorch nn.Linear weight, i.e. (in_dim, hidden).
    Returns a dict consumed by encoder_forward; re-using it across calls avoids
    re-reading the f32 weight from HBM to make a bf16 copy on every step.
    """
    K, N = w_t.shape
    assert b.shape == (N,)
    itemsize = jnp.dtype(weight_dtype).itemsize
    tile_budget, vmem_limit = _vmem_budgets()

    # Lane-dense output tile.
    tn = 128 if N <= 128 else 256
    # v7x megacore: guarantee >= 2 "parallel" grid steps when the weight slab is
    # big enough that one extra ~0.35us grid step is noise.
    if K * N * itemsize > 512 * 1024 and N > 128 and _round_up(N, tn) // tn < 2:
        tn = 128
    Np = _round_up(N, tn)

    # Reduction tile sized so double-buffered input tiles (at tm = _TM_MAX) plus
    # double-buffered output + accumulator + bias stay inside the tile budget.
    fixed_bytes = 3 * _TM_MAX * tn * 4 + 2 * 8 * tn * 4
    tk_max = (tile_budget - fixed_bytes) // (2 * (_TM_MAX + tn) * itemsize)
    tk_max = max(256, (tk_max // 128) * 128)

    Kp128 = _round_up(K, 128)
    if Kp128 <= tk_max:
        tk, Kp, nk = Kp128, Kp128, 1          # whole K in one step, no scratch
    else:
        nk = _cdiv(Kp128, tk_max)
        tk = _round_up(_cdiv(Kp128, nk), 128)  # minimise K padding
        Kp = nk * tk

    wp = w_t.astype(weight_dtype)
    if (Kp, Np) != (K, N):
        wp = jnp.pad(wp, ((0, Kp - K), (0, Np - N)))
    bp = b.astype(jnp.float32)
    if Np != N:
        bp = jnp.pad(bp, (0, Np - N))

    return dict(wp=wp, b2d=bp.reshape(1, Np), K=K, N=N,
                tn=tn, tk=tk, nk=nk, vmem_limit=vmem_limit)


# ----------------------------- forward ---------------------------------------


def encoder_forward(params, x):
    """relu(x @ W^T + b) with W^T / b pre-packed by prepare_encoder_params."""
    M, K = x.shape
    assert K == params["K"]
    wp, b2d = params["wp"], params["b2d"]
    tn, tk, nk = params["tn"], params["tk"], params["nk"]
    Kp, Np = wp.shape
    N = params["N"]
    out_dtype = x.dtype
    compute_dtype = wp.dtype
    itemsize = jnp.dtype(compute_dtype).itemsize

    # Row tile: 16-aligned (packed bf16 sublanes), <= 256, minimal padding.
    Mp16 = _round_up(M, 16)
    if Mp16 <= _TM_MAX:
        tm, Mp = Mp16, Mp16
    else:
        nm = _cdiv(Mp16, _TM_MAX)
        tm = _round_up(_cdiv(Mp16, nm), 16)
        Mp = nm * tm

    xp = x.astype(compute_dtype)
    if (Mp, Kp) != (M, K):
        xp = jnp.pad(xp, ((0, Mp - M), (0, Kp - K)))

    cost = pl.CostEstimate(
        flops=2 * Mp * Np * Kp,
        transcendentals=0,
        bytes_accessed=int(
            xp.size * itemsize + wp.size * itemsize + b2d.size * 4
            + Mp * Np * jnp.dtype(out_dtype).itemsize
        ),
    )
    cparams = pltpu.CompilerParams(
        dimension_semantics=(("parallel", "parallel") if nk == 1
                             else ("parallel", "parallel", "arbitrary")),
        vmem_limit_bytes=params["vmem_limit"],
    )

    mi, nj = Mp // tm, Np // tn

    if nk == 1:
        # Shape-aware operand reuse: the operand whose block index follows the
        # OUTER grid axis is fetched exactly once; the other is re-fetched once
        # per outer step.  Pick the ordering with less HBM traffic.
        bytes_default = Mp * Kp + mi * Kp * Np   # x once, W re-fetched mi times
        bytes_swapped = nj * Mp * Kp + Kp * Np   # W once, x re-fetched nj times
        if bytes_swapped < bytes_default:
            grid = (nj, mi)
            x_map = lambda j, i: (i, 0)
            w_map = lambda j, i: (0, j)
            b_map = lambda j, i: (0, j)
            o_map = lambda j, i: (i, j)
        else:
            grid = (mi, nj)
            x_map = lambda i, j: (i, 0)
            w_map = lambda i, j: (0, j)
            b_map = lambda i, j: (0, j)
            o_map = lambda i, j: (i, j)

        out = pl.pallas_call(
            _encoder_kernel_fused,
            out_shape=jax.ShapeDtypeStruct((Mp, Np), out_dtype),
            grid=grid,
            in_specs=[
                pl.BlockSpec((tm, Kp), x_map),   # x slab
                pl.BlockSpec((Kp, tn), w_map),   # W^T slab
                pl.BlockSpec((1, tn), b_map),    # bias
            ],
            out_specs=pl.BlockSpec((tm, tn), o_map),
            compiler_params=cparams,
            cost_estimate=cost,
        )(xp, wp, b2d)
    else:
        # Huge in_dim: accumulate over K with the reduction axis last.
        out = pl.pallas_call(
            _encoder_kernel_ksplit,
            out_shape=jax.ShapeDtypeStruct((Mp, Np), out_dtype),
            grid=(mi, nj, nk),
            in_specs=[
                pl.BlockSpec((tm, tk), lambda i, j, k: (i, k)),
                pl.BlockSpec((tk, tn), lambda i, j, k: (k, j)),
                pl.BlockSpec((1, tn), lambda i, j, k: (0, j)),
            ],
            out_specs=pl.BlockSpec((tm, tn), lambda i, j, k: (i, j)),
            scratch_shapes=[pltpu.VMEM((tm, tn), jnp.float32)],
            compiler_params=cparams,
            cost_estimate=cost,
        )(xp, wp, b2d)

    if (Mp, Np) == (M, N):
        return out                 # kernel already wrote the final dtype
    return out[:M, :N]


# ----------------------------- demo / self-test ------------------------------

if __name__ == "__main__":
    key = jax.random.PRNGKey(0)
    kx, kw, kb, kx2, kw2, kb2 = jax.random.split(key, 6)

    # Scaled-down Encoder shapes (module: Linear(in_dim, hidden_dim) + ReLU).
    batch, in_dim, hidden_dim = 8, 512, 256
    bound = 1.0 / (in_dim ** 0.5)
    x = jax.random.normal(kx, (batch, in_dim), dtype=jnp.float32)
    # PyTorch stores weight as (hidden, in); we keep its transpose (in, hidden).
    w_t = jax.random.uniform(kw, (in_dim, hidden_dim), minval=-bound,
                             maxval=bound, dtype=jnp.float32)
    b = jax.random.uniform(kb, (hidden_dim,), minval=-bound, maxval=bound,
                           dtype=jnp.float32)

    params = prepare_encoder_params(w_t, b)          # one-time cast + pad
    fwd = jax.jit(lambda xx: encoder_forward(params, xx))

    out = jax.block_until_ready(fwd(x))
    assert out.shape == (batch, hidden_dim) and out.dtype == x.dtype

    # Tight check: same bf16-rounded operands, f32 math (verifies the kernel).
    xb = x.astype(jnp.bfloat16).astype(jnp.float32)
    wb = w_t.astype(jnp.bfloat16).astype(jnp.float32)
    ref_bf = jnp.maximum(xb @ wb + b, 0.0)
    assert jnp.allclose(out, ref_bf, atol=2e-3, rtol=2e-3), "mismatch vs bf16 ref"

    # Loose check: full-f32 module semantics (only bf16 input rounding differs).
    ref_f32 = jnp.maximum(x @ w_t + b, 0.0)
    assert jnp.allclose(out, ref_f32, atol=3e-2, rtol=3e-2), "mismatch vs f32 ref"

    # Ragged shapes exercise padding / output-slice / grid-ordering paths.
    m2, k2, n2 = 5, 300, 200
    bound2 = 1.0 / (k2 ** 0.5)
    x2 = jax.random.normal(kx2, (m2, k2), dtype=jnp.float32)
    w2 = jax.random.uniform(kw2, (k2, n2), minval=-bound2, maxval=bound2,
                            dtype=jnp.float32)
    bb2 = jax.random.uniform(kb2, (n2,), minval=-bound2, maxval=bound2,
                             dtype=jnp.float32)
    params2 = prepare_encoder_params(w2, bb2)
    out2 = jax.block_until_ready(encoder_forward(params2, x2))
    ref2 = jnp.maximum(
        x2.astype(jnp.bfloat16).astype(jnp.float32)
        @ w2.astype(jnp.bfloat16).astype(jnp.float32) + bb2, 0.0
    )
    assert out2.shape == (m2, n2)
    assert jnp.allclose(out2, ref2, atol=2e-3, rtol=2e-3), "mismatch (ragged path)"

    print("KERNEL_OK")
</pallas_src>

<mosaic_0001>
module attributes {stable_mosaic.version = 11 : i64} {
  func.func @_encoder_kernel_fused(%arg0: i32, %arg1: i32, %arg2: memref<16x512xbf16, #tpu.memory_space<vmem>>, %arg3: memref<512x256xbf16, #tpu.memory_space<vmem>>, %arg4: memref<1x256xf32, #tpu.memory_space<vmem>>, %arg5: memref<16x256xf32, #tpu.memory_space<vmem>>) attributes {dimension_semantics = [#tpu.dimension_semantics<parallel>, #tpu.dimension_semantics<parallel>], iteration_bounds = array<i64: 1, 1>, scalar_prefetch = 0 : i64, scratch_operands = 0 : i64, tpu.core_type = #tpu.core_type<tc>, window_params = [{transform_indices = @transform_0, window_bounds = array<i64: 16, 512>}, {transform_indices = @transform_1, window_bounds = array<i64: 512, 256>}, {transform_indices = @transform_2, window_bounds = array<i64: 1, 256>}, {transform_indices = @transform_3, window_bounds = array<i64: 16, 256>}]} {
    %c0 = arith.constant 0 : index
    %c0_0 = arith.constant 0 : index
    %0 = vector.load %arg2[%c0, %c0_0] : memref<16x512xbf16, #tpu.memory_space<vmem>>, vector<16x512xbf16>
    %c0_1 = arith.constant 0 : index
    %c0_2 = arith.constant 0 : index
    %1 = vector.load %arg3[%c0_1, %c0_2] : memref<512x256xbf16, #tpu.memory_space<vmem>>, vector<512x256xbf16>
    %cst = arith.constant dense<0.000000e+00> : vector<16x256xf32>
    %2 = tpu.matmul %0, %1, %cst {dimension_numbers = #tpu.dot_dimension_numbers<[1], [0], [0], [1], [0, 0, 1, 1], [], []>} : vector<16x512xbf16>, vector<512x256xbf16>, vector<16x256xf32> -> vector<16x256xf32>
    %c0_3 = arith.constant 0 : index
    %c0_4 = arith.constant 0 : index
    %3 = vector.load %arg4[%c0_3, %c0_4] : memref<1x256xf32, #tpu.memory_space<vmem>>, vector<1x256xf32>
    %4 = vector.broadcast %3 : vector<1x256xf32> to vector<16x256xf32>
    %5 = arith.addf %2, %4 : vector<16x256xf32>
    %cst_5 = arith.constant 0.000000e+00 : f32
    %6 = vector.broadcast %cst_5 : f32 to vector<16x256xf32>
    %7 = arith.maximumf %5, %6 : vector<16x256xf32>
    %c0_6 = arith.constant 0 : index
    %c0_7 = arith.constant 0 : index
    %8 = vector.load %arg5[%c0_6, %c0_7] : memref<16x256xf32, #tpu.memory_space<vmem>>, vector<16x256xf32>
    tpu.vector_store %arg5[%c0_6, %c0_7], %7 {strides = array<i32>} : memref<16x256xf32, #tpu.memory_space<vmem>>, vector<16x256xf32>,
    return
  }
  func.func @transform_0(%arg0: i32, %arg1: i32) -> (i32, i32) {
    %c0_i32 = arith.constant 0 : i32
    %c0_i32_0 = arith.constant 0 : i32
    return %arg0, %c0_i32 : i32, i32
  }
  func.func @transform_1(%arg0: i32, %arg1: i32) -> (i32, i32) {
    %c0_i32 = arith.constant 0 : i32
    %c0_i32_0 = arith.constant 0 : i32
    return %c0_i32, %arg1 : i32, i32
  }
  func.func @transform_2(%arg0: i32, %arg1: i32) -> (i32, i32) {
    %c0_i32 = arith.constant 0 : i32
    %c0_i32_0 = arith.constant 0 : i32
    return %c0_i32, %arg1 : i32, i32
  }
  func.func @transform_3(%arg0: i32, %arg1: i32) -> (i32, i32) {
    %c0_i32 = arith.constant 0 : i32
    return %arg0, %arg1 : i32, i32
  }
}

</mosaic_0001>

<bundles_post_ra>
// kernel: _lambda_.1
= control target key start
LH: loop header
LB: loop body
LE: loop exit
PB: predicated region body
PF: predicated region fallthrough
CT: control target
= control target key end

     0   :  { %s949_s1 = inlined_call_operand.vmem [shape: bf16[512,256], index: 1, kind: input, shape index: {}]   ;;  %s950_s0 = inlined_call_operand.vmem [shape: bf16[16,512], index: 0, kind: input, shape index: {}]   ;;  %s951_s2 = inlined_call_operand.vmem [shape: f32[1,256], index: 2, kind: input, shape index: {}]   ;;  %s952_s3 = inlined_call_operand.vmem [shape: f32[16,256], index: 3, kind: output, shape index: {}]  }
   0x1   :  { %v608_v0 = vld [vmem:[%s949_s1 + $0x4] ss:$8 sps:$4 sm:$0xff]   ;;  %v612_v2 = vld [vmem:[%s949_s1] ss:$8 sps:$4 sm:$0xff]   ;;  %v614_v4 = vld [vmem:[%s949_s1 + $0x14] ss:$8 sps:$4 sm:$0xff]  }
   0x2   :  { %v610_v1 = vld [vmem:[%s949_s1 + $0x104] ss:$8 sps:$4 sm:$0xff]   ;;  %434 = vmatprep.subr.bf16.mxu1 %v608_v0  ;;  %v613_v3 = vld [vmem:[%s949_s1 + $0x100] ss:$8 sps:$4 sm:$0xff]   ;;  %v616_v5 = vld [vmem:[%s949_s1 + $0x114] ss:$8 sps:$4 sm:$0xff]  }
   0x3   :  { %477 = vmatprep.subr.bf16.mxu0 %v610_v1  ;;  %435 = vmatpush1.bf16.msra.mxu1 %v612_v2  ;;  %v618_v6 = vld [vmem:[%s949_s1 + $0x10] ss:$8 sps:$4 sm:$0xff]   ;;  %v620_v8 = vld [vmem:[%s949_s1 + $0x24] ss:$8 sps:$4 sm:$0xff]   ;;  %v624_v10 = vld [vmem:[%s949_s1 + $0x20] ss:$8 sps:$4 sm:$0xff]  }
   0x4   :  { %478 = vmatpush1.bf16.msra.mxu0 %v613_v3  ;;  %436 = vmatprep.subr.bf16.mxu1 %v614_v4  ;;  %v619_v7 = vld [vmem:[%s949_s1 + $0x110] ss:$8 sps:$4 sm:$0xff]   ;;  %v622_v9 = vld [vmem:[%s949_s1 + $0x124] ss:$8 sps:$4 sm:$0xff]   ;;  %v625_v11 = vld [vmem:[%s949_s1 + $0x120] ss:$8 sps:$4 sm:$0xff]   ;;  %v84_v4 = vlaneseq }
   0x5   :  { %479 = vmatprep.subr.bf16.mxu0 %v616_v5  ;;  %v626_v12 = vld [vmem:[%s949_s1 + $0x34] ss:$8 sps:$4 sm:$0xff]   ;;  %v630_v14 = vld [vmem:[%s949_s1 + $0x30] ss:$8 sps:$4 sm:$0xff]   ;;  %v632_v16 = vld [vmem:[%s949_s1 + $0x44] ss:$8 sps:$4 sm:$0xff]  }
   0x6   :  { %v628_v13 = vld [vmem:[%s949_s1 + $0x134] ss:$8 sps:$4 sm:$0xff]   ;;  %v631_v15 = vld [vmem:[%s949_s1 + $0x130] ss:$8 sps:$4 sm:$0xff]   ;;  %v634_v17 = vld [vmem:[%s949_s1 + $0x144] ss:$8 sps:$4 sm:$0xff]  }
   0x7   :  { %437 = vmatpush1.bf16.msra.mxu1 %v618_v6  ;;  %v636_v18 = vld [vmem:[%s949_s1 + $0x40] ss:$8 sps:$4 sm:$0xff]   ;;  %v638_v20 = vld [vmem:[%s949_s1 + $0x54] ss:$8 sps:$4 sm:$0xff]   ;;  %v642_v22 = vld [vmem:[%s949_s1 + $0x50] ss:$8 sps:$4 sm:$0xff]  }
   0x8   :  { %480 = vmatpush1.bf16.msra.mxu0 %v619_v7  ;;  %438 = vmatprep.subr.bf16.mxu1 %v620_v8  ;;  %v637_v19 = vld [vmem:[%s949_s1 + $0x140] ss:$8 sps:$4 sm:$0xff]   ;;  %v640_v21 = vld [vmem:[%s949_s1 + $0x154] ss:$8 sps:$4 sm:$0xff]   ;;  %v643_v23 = vld [vmem:[%s949_s1 + $0x150] ss:$8 sps:$4 sm:$0xff]  }
   0x9   :  { %481 = vmatprep.subr.bf16.mxu0 %v622_v9  ;;  %v644_v24 = vld [vmem:[%s949_s1 + $0x64] ss:$8 sps:$4 sm:$0xff]   ;;  %v648_v26 = vld [vmem:[%s949_s1 + $0x60] ss:$8 sps:$4 sm:$0xff]   ;;  %v650_v28 = vld [vmem:[%s949_s1 + $0x74] ss:$8 sps:$4 sm:$0xff]  }
   0xa   :  { %v646_v25 = vld [vmem:[%s949_s1 + $0x164] ss:$8 sps:$4 sm:$0xff]   ;;  %v649_v27 = vld [vmem:[%s949_s1 + $0x160] ss:$8 sps:$4 sm:$0xff]   ;;  %v652_v29 = vld [vmem:[%s949_s1 + $0x174] ss:$8 sps:$4 sm:$0xff]  }
   0xb   :  { %439 = vmatpush1.bf16.msra.mxu1 %v624_v10  ;;  %v654_v30 = vld [vmem:[%s949_s1 + $0x70] ss:$8 sps:$4 sm:$0xff]   ;;  %v656_v32 = vld [vmem:[%s949_s1 + $0x84] ss:$8 sps:$4 sm:$0xff]   ;;  %v660_v34 = vld [vmem:[%s949_s1 + $0x80] ss:$8 sps:$4 sm:$0xff]  }
   0xc   :  { %482 = vmatpush1.bf16.msra.mxu0 %v625_v11  ;;  %440 = vmatprep.subr.bf16.mxu1 %v626_v12  ;;  %v655_v31 = vld [vmem:[%s949_s1 + $0x170] ss:$8 sps:$4 sm:$0xff]   ;;  %v658_v33 = vld [vmem:[%s949_s1 + $0x184] ss:$8 sps:$4 sm:$0xff]   ;;  %v661_v35 = vld [vmem:[%s949_s1 + $0x180] ss:$8 sps:$4 sm:$0xff]  }
   0xd   :  { %483 = vmatprep.subr.bf16.mxu0 %v628_v13  ;;  %v662_v36 = vld [vmem:[%s949_s1 + $0x94] ss:$8 sps:$4 sm:$0xff]   ;;  %v666_v38 = vld [vmem:[%s949_s1 + $0x90] ss:$8 sps:$4 sm:$0xff]   ;;  %v668_v40 = vld [vmem:[%s949_s1 + $0xa4] ss:$8 sps:$4 sm:$0xff]  }
   0xe   :  { %v664_v37 = vld [vmem:[%s949_s1 + $0x194] ss:$8 sps:$4 sm:$0xff]   ;;  %v667_v39 = vld [vmem:[%s949_s1 + $0x190] ss:$8 sps:$4 sm:$0xff]   ;;  %v670_v41 = vld [vmem:[%s949_s1 + $0x1a4] ss:$8 sps:$4 sm:$0xff]  }
   0xf   :  { %441 = vmatpush1.bf16.msra.mxu1 %v630_v14  ;;  %v672_v42 = vld [vmem:[%s949_s1 + $0xa0] ss:$8 sps:$4 sm:$0xff]   ;;  %v674_v44 = vld [vmem:[%s949_s1 + $0xb4] ss:$8 sps:$4 sm:$0xff]   ;;  %v678_v46 = vld [vmem:[%s949_s1 + $0xb0] ss:$8 sps:$4 sm:$0xff]  }
  0x10   :  { %484 = vmatpush1.bf16.msra.mxu0 %v631_v15  ;;  %442 = vmatprep.subr.bf16.mxu1 %v632_v16  ;;  %v673_v43 = vld [vmem:[%s949_s1 + $0x1a0] ss:$8 sps:$4 sm:$0xff]   ;;  %v676_v45 = vld [vmem:[%s949_s1 + $0x1b4] ss:$8 sps:$4 sm:$0xff]   ;;  %v679_v48 = vld [vmem:[%s949_s1 + $0x1b0] ss:$8 sps:$4 sm:$0xff]  }
  0x11   :  { %485 = vmatprep.subr.bf16.mxu0 %v634_v17  ;;  %v706_v47 = vld [vmem:[%s950_s0 + $0x4] ss:$16 sps:$4 sm:$0xff]   ;;  %v709_v51 = vld [vmem:[%s950_s0 + $0xc] ss:$16 sps:$4 sm:$0xff]   ;;  %v684_v52 = vld [vmem:[%s949_s1 + $0xc0] ss:$8 sps:$4 sm:$0xff]  }
  0x12   :  { %v680_v49 = vld [vmem:[%s949_s1 + $0xc4] ss:$8 sps:$4 sm:$0xff]   ;;  %466 = vmatprep.mubr.bf16.mxu1 %v706_v47  ;;  %509 = vmatprep.mubr.bf16.mxu0 %v709_v51  ;;  %v685_v53 = vld [vmem:[%s949_s1 + $0x1c0] ss:$8 sps:$4 sm:$0xff]   ;;  %v686_v54 = vld [vmem:[%s949_s1 + $0xd4] ss:$8 sps:$4 sm:$0xff]  }
  0x13   :  { %443 = vmatpush1.bf16.msra.mxu1 %v636_v18  ;;  %v682_v50 = vld [vmem:[%s949_s1 + $0x1c4] ss:$8 sps:$4 sm:$0xff]   ;;  %v688_v55 = vld [vmem:[%s949_s1 + $0x1d4] ss:$8 sps:$4 sm:$0xff]   ;;  %v690_v56 = vld [vmem:[%s949_s1 + $0xd0] ss:$8 sps:$4 sm:$0xff]  }
  0x14   :  { %486 = vmatpush1.bf16.msra.mxu0 %v637_v19  ;;  %444 = vmatprep.subr.bf16.mxu1 %v638_v20  ;;  %v691_v57 = vld [vmem:[%s949_s1 + $0x1d0] ss:$8 sps:$4 sm:$0xff]   ;;  %v692_v58 = vld [vmem:[%s949_s1 + $0xe4] ss:$8 sps:$4 sm:$0xff]   ;;  %v696_v60 = vld [vmem:[%s949_s1 + $0xe0] ss:$8 sps:$4 sm:$0xff]  }
  0x15   :  { %487 = vmatprep.subr.bf16.mxu0 %v640_v21  ;;  %v694_v59 = vld [vmem:[%s949_s1 + $0x1e4] ss:$8 sps:$4 sm:$0xff]   ;;  %v697_v61 = vld [vmem:[%s949_s1 + $0x1e0] ss:$8 sps:$4 sm:$0xff]   ;;  %v698_v62 = vld [vmem:[%s949_s1 + $0xf4] ss:$8 sps:$4 sm:$0xff]  }
  0x16   :  { %v700_v63 = vld [vmem:[%s949_s1 + $0x1f4] ss:$8 sps:$4 sm:$0xff]   ;;  %v702_v0 = vld [vmem:[%s949_s1 + $0xf0] ss:$8 sps:$4 sm:$0xff]   ;;  %v85_v5 = vshrl.u32 %v84_v4, 7 }
  0x17   :  { %445 = vmatpush1.bf16.msra.mxu1 %v642_v22  ;;  %v703_v1 = vld [vmem:[%s949_s1 + $0x1f0] ss:$8 sps:$4 sm:$0xff]   ;;  %v82_v7 = vld [vmem:[%s951_s2] sm:$0x3] }
  0x18   :  { %488 = vmatpush1.bf16.msra.mxu0 %v643_v23  ;;  %446 = vmatprep.subr.bf16.mxu1 %v644_v24  ;;  %v704_v2 = vld [vmem:[%s950_s0] ss:$16 sps:$4 sm:$0xff]   ;;  %v707_v3 = vld [vmem:[%s950_s0 + $0x8] ss:$16 sps:$4 sm:$0xff]   ;;  %v86_v6 = vsub.s32 0, %v85_v5  ;;  %v90_v8 = vsub.s32 1, %v85_v5 }
  0x19   :  { %489 = vmatprep.subr.bf16.mxu0 %v646_v25 }
  0x1a   :  { %v87_v9 = vrot.slane %v82_v7, %v86_v6  ;;  %v91_v10 = vrot.slane %v82_v7, %v90_v8 }
  0x1b   :  { %447 = vmatpush1.bf16.msra.mxu1 %v648_v26 }
  0x1c   :  { %490 = vmatpush1.bf16.msra.mxu0 %v649_v27  ;;  %448 = vmatprep.subr.bf16.mxu1 %v650_v28 }
  0x1d   :  { %491 = vmatprep.subr.bf16.mxu0 %v652_v29 }
  0x1f   :  { %449 = vmatpush1.bf16.msra.mxu1 %v654_v30 }
  0x20   :  { %492 = vmatpush1.bf16.msra.mxu0 %v655_v31  ;;  %450 = vmatprep.subr.bf16.mxu1 %v656_v32 }
  0x21   :  { %493 = vmatprep.subr.bf16.mxu0 %v658_v33 }
  0x23   :  { %451 = vmatpush1.bf16.msra.mxu1 %v660_v34 }
  0x24   :  { %494 = vmatpush1.bf16.msra.mxu0 %v661_v35  ;;  %452 = vmatprep.subr.bf16.mxu1 %v662_v36 }
  0x25   :  { %495 = vmatprep.subr.bf16.mxu0 %v664_v37 }
  0x27   :  { %453 = vmatpush1.bf16.msra.mxu1 %v666_v38 }
  0x28   :  { %496 = vmatpush1.bf16.msra.mxu0 %v667_v39  ;;  %454 = vmatprep.subr.bf16.mxu1 %v668_v40 }
  0x29   :  { %497 = vmatprep.subr.bf16.mxu0 %v670_v41 }
  0x2b   :  { %455 = vmatpush1.bf16.msra.mxu1 %v672_v42 }
  0x2c   :  { %498 = vmatpush1.bf16.msra.mxu0 %v673_v43  ;;  %456 = vmatprep.subr.bf16.mxu1 %v674_v44 }
  0x2d   :  { %499 = vmatprep.subr.bf16.mxu0 %v676_v45 }
  0x2f   :  { %457 = vmatpush1.bf16.msra.mxu1 %v678_v46 }
  0x30   :  { %500 = vmatpush1.bf16.msra.mxu0 %v679_v48  ;;  %458 = vmatprep.subr.bf16.mxu1 %v680_v49 }
  0x31   :  { %501 = vmatprep.subr.bf16.mxu0 %v682_v50 }
  0x33   :  { %459 = vmatpush1.bf16.msra.mxu1 %v684_v52 }
  0x34   :  { %502 = vmatpush1.bf16.msra.mxu0 %v685_v53  ;;  %460 = vmatprep.subr.bf16.mxu1 %v686_v54 }
  0x35   :  { %503 = vmatprep.subr.bf16.mxu0 %v688_v55 }
  0x37   :  { %461 = vmatpush1.bf16.msra.mxu1 %v690_v56 }
  0x38   :  { %504 = vmatpush1.bf16.msra.mxu0 %v691_v57  ;;  %462 = vmatprep.subr.bf16.mxu1 %v692_v58 }
  0x39   :  { %505 = vmatprep.subr.bf16.mxu0 %v694_v59 }
  0x3b   :  { %463 = vmatpush1.bf16.msra.mxu1 %v696_v60 }
  0x3c   :  { %506 = vmatpush1.bf16.msra.mxu0 %v697_v61  ;;  %464 = vmatprep.subr.bf16.mxu1 %v698_v62 }
  0x3d   :  { %507 = vmatprep.subr.bf16.mxu0 %v700_v63 }
  0x3f   :  { %465 = vmatpush1.bf16.msra.mxu1 %v702_v0 }
  0x40   :  { %508 = vmatpush1.bf16.msra.mxu0 %v703_v1 }
  0x42   :  { %467 = vmatmul.mubr.bf16.vlgmr.msra.gmra.mrb[0].mxu1 %v704_v2 }
  0x43   :  { %510 = vmatmul.mubr.bf16.vlgmr.msra.gmra.mrb[0].mxu0 %v707_v3 }
 0x115   :  { %v468_v11 = vpop.f32.mrb[0].mxu1 }
 0x116   :  { %v511_v12 = vpop.f32.mrb[0].mxu0  ;;  %v469_v13 = vadd.f32 %v468_v11, %v87_v9  ;;  %v470_v14 = vpop.f32.mrb[1].mxu1 }
 0x117   :  { %v513_v15 = vpop.f32.mrb[1].mxu0  ;;  %v471_v16 = vadd.f32 %v470_v14, %v91_v10  ;;  %v472_v17 = vpop.f32.mrb[2].mxu1 }
 0x118   :  { %v515_v18 = vpop.f32.mrb[2].mxu0  ;;  %v512_v19 = vadd.f32 %v511_v12, %v469_v13  ;;  %v473_v20 = vadd.f32 %v472_v17, %v87_v9  ;;  %v474_v21 = vpop.f32.mrb[3].mxu1 }
 0x119   :  { %v517_v22 = vpop.f32.mrb[3].mxu0  ;;  %v514_v23 = vadd.f32 %v513_v15, %v471_v16  ;;  %v475_v24 = vadd.f32 %v474_v21, %v91_v10 }
 0x11a   :  { %v520_v25 = vmax.f32 %v512_v19, 0.0  ;;  %v516_v26 = vadd.f32 %v515_v18, %v473_v20 }
 0x11b   :  { %v521_v27 = vmax.f32 %v514_v23, 0.0  ;;  %v518_v28 = vadd.f32 %v517_v22, %v475_v24 }
 0x11c   :  { %524 = vst [vmem:[%s952_s3] sm:$0xff] %v520_v25  ;;  %v522_v29 = vmax.f32 %v516_v26, 0.0 }
 0x11d   :  { %525 = vst [vmem:[%s952_s3 + $0x8] sm:$0xff] %v521_v27  ;;  %v523_v30 = vmax.f32 %v518_v28, 0.0 }
 0x11e   :  { %526 = vst [vmem:[%s952_s3 + $0x10] sm:$0xff] %v522_v29 }
 0x11f   :  { %527 = vst [vmem:[%s952_s3 + $0x18] sm:$0xff] %v523_v30 }

</bundles_post_ra>
